<compile_context>
chip_gen: v5e
topology: v5e:2x2
jax: 0.10.0
libtpu: 0.0.40
codegen_flags: <defaults>
</compile_context>

<pallas_src>
import functools

import jax
import jax.numpy as jnp
from jax.experimental import pallas as pl
from jax.experimental.pallas import tpu as pltpu


VMEM_LIMIT = 64 * 1024 * 1024


# ----------------------------------------------------------------------------
# helpers
# ----------------------------------------------------------------------------
def _time_chunk(seq_len):
    # largest multiple-of-8 divisor (lane/sublane-friendly blocks), else full S
    for t in (32, 24, 16, 8):
        if seq_len % t == 0:
            return t
    # TODO(synk): for large S not divisible by 8, use a cdiv grid + per-step
    # pl.when tail mask instead of one whole-sequence block.
    return seq_len


def _row_tile(m):
    for t in (1024, 512, 256, 128, 64, 32, 16, 8):
        if m % t == 0:
            return t
    return m


# ----------------------------------------------------------------------------
# Kernel 1: fused  mean(last-4 hidden states) + (diff, flag) features
#           + layer-1 LSTM input projection for BOTH directions (batch-major).
#   diff[i] = mean(emb[i,:]) - mean(emb[argmax(pred),:])   (pred mean from wrapper)
#   flag[i] = 1 if roles[i] not in {0, -100}                (from wrapper)
#   xp[d,b,i,:] = emb[i,:] @ Wm[d] + diff[i]*We[d,0] + flag[i]*We[d,1] + b[d]
# ----------------------------------------------------------------------------
def feature_proj_kernel(h0_ref, h1_ref, h2_ref, h3_ref, pm_ref, flag_ref,
                        wm_ref, we_ref, b_ref, xp_ref):
    # mean of the last-4 hidden states (bf16 in HBM, f32 accumulation)
    emb = (h0_ref[0].astype(jnp.float32) + h1_ref[0].astype(jnp.float32)
           + h2_ref[0].astype(jnp.float32)
           + h3_ref[0].astype(jnp.float32)) * 0.25               # (S,E) f32

    diff = jnp.mean(emb, axis=-1, keepdims=True) - pm_ref[0]     # (S,1)
    flag = flag_ref[0]                                           # (S,1)
    emb_bf = emb.astype(jnp.bfloat16)                            # hoisted cast

    for d in range(2):                                           # static
        proj = (jnp.dot(emb_bf, wm_ref[d],
                        preferred_element_type=jnp.float32)
                + diff * we_ref[d, 0:1, :]
                + flag * we_ref[d, 1:2, :]
                + b_ref[d])                                      # (S,4H) f32
        xp_ref[d, 0] = proj


def feature_projection(hs, pred_mean, flag, w_main, w_extra, bias):
    B, S, E = hs[0].shape
    G = w_main.shape[-1]
    return pl.pallas_call(
        feature_proj_kernel,
        out_shape=jax.ShapeDtypeStruct((2, B, S, G), jnp.float32),
        grid_spec=pltpu.PrefetchScalarGridSpec(
            num_scalar_prefetch=0,
            grid=(B,),
            in_specs=[pl.BlockSpec((1, S, E), lambda b: (b, 0, 0)),
                      pl.BlockSpec((1, S, E), lambda b: (b, 0, 0)),
                      pl.BlockSpec((1, S, E), lambda b: (b, 0, 0)),
                      pl.BlockSpec((1, S, E), lambda b: (b, 0, 0)),
                      pl.BlockSpec((1, 1, 1), lambda b: (b, 0, 0)),
                      pl.BlockSpec((1, S, 1), lambda b: (b, 0, 0)),
                      pl.BlockSpec((2, E, G), lambda b: (0, 0, 0)),
                      pl.BlockSpec((2, 2, G), lambda b: (0, 0, 0)),
                      pl.BlockSpec((2, 1, G), lambda b: (0, 0, 0))],
            out_specs=pl.BlockSpec((2, 1, S, G), lambda b: (0, b, 0, 0)),
        ),
        compiler_params=pltpu.CompilerParams(
            dimension_semantics=("parallel",),
            vmem_limit_bytes=VMEM_LIMIT),
    )(hs[0], hs[1], hs[2], hs[3], pred_mean, flag, w_main, w_extra, bias)


# ----------------------------------------------------------------------------
# Kernel 2: bi-directional LSTM recurrence, both directions fused per step.
#   grid = (time-chunk,); the forward chain walks chunks 0..nC-1 while the
#   backward chain walks chunks nC-1..0 (separate in/out BlockSpecs with a
#   reversed index_map — no flips, no direction grid axis).  The two chains
#   are independent and interleaved in one basic block so v5e/v6e hide each
#   other's per-step MXU/EUP latency.  xp already contains x @ W_ih + b.
# ----------------------------------------------------------------------------
def bilstm_kernel(xpf_ref, xpb_ref, whh_ref, outf_ref, outb_ref,
                  hf_scr, cf_scr, hb_scr, cb_scr, *, hidden, t_chunk):
    @pl.when(pl.program_id(0) == 0)
    def _init():
        hf_scr[...] = jnp.zeros_like(hf_scr)
        cf_scr[...] = jnp.zeros_like(cf_scr)
        hb_scr[...] = jnp.zeros_like(hb_scr)
        cb_scr[...] = jnp.zeros_like(cb_scr)

    whh_f = whh_ref[0]                                   # (H,4H) bf16
    whh_b = whh_ref[1]

    def gates_to_hc(gates, c_prev):
        i = jax.nn.sigmoid(gates[:, 0 * hidden:1 * hidden])
        f = jax.nn.sigmoid(gates[:, 1 * hidden:2 * hidden])
        g = jnp.tanh(gates[:, 2 * hidden:3 * hidden])
        o = jax.nn.sigmoid(gates[:, 3 * hidden:4 * hidden])
        c = f * c_prev + i * g
        return o * jnp.tanh(c), c

    for k in range(t_chunk):                             # static unroll
        kb = t_chunk - 1 - k
        x_f = xpf_ref[0, :, k, :]                        # (B,4H) f32
        x_b = xpb_ref[0, :, kb, :]
        g_f = x_f + jnp.dot(hf_scr[...].astype(whh_f.dtype), whh_f,
                            preferred_element_type=jnp.float32)
        g_b = x_b + jnp.dot(hb_scr[...].astype(whh_b.dtype), whh_b,
                            preferred_element_type=jnp.float32)
        h_f, c_f = gates_to_hc(g_f, cf_scr[...])
        h_b, c_b = gates_to_hc(g_b, cb_scr[...])
        hf_scr[...] = h_f
        cf_scr[...] = c_f
        hb_scr[...] = h_b
        cb_scr[...] = c_b
        outf_ref[:, k, :] = h_f
        outb_ref[:, kb, :] = h_b


def bilstm_layer(xp, whh, hidden, t_chunk):
    # xp: (2, B, S, 4H) batch-major f32; whh: (2, H, 4H) bf16
    _, B, S, G = xp.shape
    nC = S // t_chunk
    kernel = functools.partial(bilstm_kernel, hidden=hidden, t_chunk=t_chunk)
    out_sd = jax.ShapeDtypeStruct((B, S, hidden), jnp.float32)
    # NOTE: for real model sizes pad H to a multiple of 128 and B to a multiple
    # of 8 so gate slices / per-step stores stay lane- and sublane-aligned.
    return pl.pallas_call(
        kernel,
        out_shape=(out_sd, out_sd),
        grid_spec=pltpu.PrefetchScalarGridSpec(
            num_scalar_prefetch=0,
            grid=(nC,),
            in_specs=[pl.BlockSpec((1, B, t_chunk, G),
                                   lambda c: (0, 0, c, 0)),
                      pl.BlockSpec((1, B, t_chunk, G),
                                   lambda c: (1, 0, nC - 1 - c, 0)),
                      pl.BlockSpec((2, hidden, G), lambda c: (0, 0, 0))],
            out_specs=(pl.BlockSpec((B, t_chunk, hidden),
                                    lambda c: (0, c, 0)),
                       pl.BlockSpec((B, t_chunk, hidden),
                                    lambda c: (0, nC - 1 - c, 0))),
            scratch_shapes=[pltpu.VMEM((B, hidden), jnp.float32)] * 4,
        ),
        compiler_params=pltpu.CompilerParams(
            dimension_semantics=("arbitrary",),
            vmem_limit_bytes=VMEM_LIMIT),
    )(xp, xp, whh)


# ----------------------------------------------------------------------------
# Kernel 3: dual-input row-tiled linear
#   out[d] = x_fwd @ w[d,0] + x_bwd @ w[d,1] + b[d]
#   == concat([x_fwd, x_bwd], -1) @ W_full[d] + b[d]  (no concat materialized;
#   each x tile is read once for all D output heads).
#   Used for the layer-2 LSTM input projection (D=2 directions) and the final
#   classifier (D=1, output lane-padded to 128).
# ----------------------------------------------------------------------------
def dual_linear_kernel(xf_ref, xb_ref, w_ref, b_ref, o_ref, *, ndir):
    xf = xf_ref[...].astype(jnp.bfloat16)                # casts hoisted
    xb = xb_ref[...].astype(jnp.bfloat16)
    for d in range(ndir):                                # static
        o_ref[d] = (jnp.dot(xf, w_ref[d, 0], preferred_element_type=jnp.float32)
                    + jnp.dot(xb, w_ref[d, 1], preferred_element_type=jnp.float32)
                    + b_ref[d])


def dual_linear(x_fwd, x_bwd, w, b):
    # x_fwd/x_bwd: (M, K) f32; w: (D, 2, K, N) bf16; b: (D, 1, N) f32
    M, K = x_fwd.shape
    D, _, _, N = w.shape
    TM = _row_tile(M)
    kernel = functools.partial(dual_linear_kernel, ndir=D)
    return pl.pallas_call(
        kernel,
        out_shape=jax.ShapeDtypeStruct((D, M, N), jnp.float32),
        grid_spec=pltpu.PrefetchScalarGridSpec(
            num_scalar_prefetch=0,
            grid=(M // TM,),
            in_specs=[pl.BlockSpec((TM, K), lambda m: (m, 0)),
                      pl.BlockSpec((TM, K), lambda m: (m, 0)),
                      pl.BlockSpec((D, 2, K, N), lambda m: (0, 0, 0, 0)),
                      pl.BlockSpec((D, 1, N), lambda m: (0, 0, 0))],
            out_specs=pl.BlockSpec((D, TM, N), lambda m: (0, m, 0)),
        ),
        compiler_params=pltpu.CompilerParams(
            dimension_semantics=("parallel",),
            vmem_limit_bytes=VMEM_LIMIT),
    )(x_fwd, x_bwd, w, b)


# ----------------------------------------------------------------------------
# Parameter construction (deterministic, synthetic)
# ----------------------------------------------------------------------------
def init_params(key, vocab, E, H, classes):
    keys = iter(jax.random.split(key, 64))

    def u(shape, scale):
        return jax.random.uniform(next(keys), shape, jnp.float32, -scale, scale)

    s = float(H) ** -0.5
    G = 4 * H
    params = {"hidden": H, "classes": classes}

    # TODO(synk): pretrained BERT has no Pallas equivalent; 4 deterministic
    # bf16 embedding tables stand in for the last 4 hidden states.
    params["emb_tables"] = [u((vocab, E), 0.5).astype(jnp.bfloat16)
                            for _ in range(4)]

    # layer 1 (Din = E + 2): main (E rows -> MXU, bf16) + extra (diff/flag
    # rows -> VALU, f32); combined bias b_ih + b_hh pre-added into the proj.
    wih1 = u((2, E + 2, G), s)
    params["l1_w_main"] = wih1[:, :E, :].astype(jnp.bfloat16)
    params["l1_w_extra"] = wih1[:, E:, :]
    params["l1_b"] = u((2, 1, G), s) + u((2, 1, G), s)
    params["l1_whh"] = u((2, H, G), s).astype(jnp.bfloat16)

    # layer 2 (Din = 2H): split the input dim into (fwd-half, bwd-half) so the
    # kernel consumes h_fwd / h_bwd separately (no concat materialization).
    wih2 = u((2, 2 * H, G), s)
    params["l2_w"] = wih2.reshape(2, 2, H, G).astype(jnp.bfloat16)
    params["l2_b"] = u((2, 1, G), s) + u((2, 1, G), s)
    params["l2_whh"] = u((2, H, G), s).astype(jnp.bfloat16)

    # classifier: same fwd/bwd split, output lane-padded to a multiple of 128.
    n_pad = ((classes + 127) // 128) * 128
    w_out = u((2 * H, classes), 0.2)
    b_out = u((classes,), 0.2)
    w_pad = jnp.zeros((2 * H, n_pad), jnp.float32).at[:, :classes].set(w_out)
    params["w_out"] = w_pad.reshape(1, 2, H, n_pad).astype(jnp.bfloat16)
    params["b_out"] = jnp.zeros((1, 1, n_pad), jnp.float32
                                ).at[0, 0, :classes].set(b_out)
    return params


# ----------------------------------------------------------------------------
# Full forward
# ----------------------------------------------------------------------------
def argument_classification_forward(params, input_ids, attention_mask,
                                    roles, predicates):
    # TODO(synk): attention_mask only affects the untranslatable BERT encoder;
    # the synthetic embedding stand-in ignores it.
    hs = [tbl[input_ids] for tbl in params["emb_tables"]]     # 4 x (B,S,E) bf16
    B, S, E = hs[0].shape
    H = params["hidden"]
    G = 4 * H
    t_chunk = _time_chunk(S)

    # predicate-token features computed once in the wrapper (tiny gathers), so
    # kernel 1 needs no whole-sequence argmax / role scan.
    idx = jnp.argmax(predicates, axis=-1)                               # (B,)
    bidx = jnp.arange(B)
    pred_row = sum(h[bidx, idx].astype(jnp.float32) for h in hs) * 0.25  # (B,E)
    pred_mean = jnp.mean(pred_row, axis=-1, keepdims=True)[..., None]    # (B,1,1)
    flag = ((roles != 0) & (roles != -100)
            ).astype(jnp.float32)[..., None]                             # (B,S,1)

    # fused mean4 + features + layer-1 input projection, batch-major output
    xp1 = feature_projection(hs, pred_mean, flag,
                             params["l1_w_main"], params["l1_w_extra"],
                             params["l1_b"])                   # (2,B,S,4H)

    h1f, h1b = bilstm_layer(xp1, params["l1_whh"], H, t_chunk)  # 2 x (B,S,H)
    # nn.LSTM inter-layer dropout(0.3) is identity at inference time.

    xp2 = dual_linear(h1f.reshape(B * S, H), h1b.reshape(B * S, H),
                      params["l2_w"], params["l2_b"])          # (2,B*S,4H)
    xp2 = xp2.reshape(2, B, S, G)
    h2f, h2b = bilstm_layer(xp2, params["l2_whh"], H, t_chunk)  # 2 x (B,S,H)

    logits = dual_linear(h2f.reshape(B * S, H), h2b.reshape(B * S, H),
                         params["w_out"], params["b_out"])     # (1,B*S,128)
    return logits[0, :, :params["classes"]].reshape(B, S, -1)  # (B,S,classes)


if __name__ == "__main__":
    B, S, E, H, classes, vocab = 2, 8, 32, 16, 5, 100
    key = jax.random.PRNGKey(0)
    k_ids, k_par = jax.random.split(key)

    input_ids = jax.random.randint(k_ids, (B, S), 0, vocab, dtype=jnp.int32)
    attention_mask = jnp.ones((B, S), dtype=jnp.int32)
    roles = jnp.array([[0, 3, 0, -100, 2, 0, 1, 0],
                       [5, 0, -100, -100, 0, 4, 0, 0]], dtype=jnp.int32)
    predicates = jnp.zeros((B, S), dtype=jnp.int32).at[0, 2].set(1).at[1, 5].set(1)

    params = init_params(k_par, vocab, E, H, classes)

    out = argument_classification_forward(params, input_ids, attention_mask,
                                          roles, predicates)
    out = jax.block_until_ready(out)
    assert out.shape == (B, S, classes), out.shape
    print("KERNEL_OK")
</pallas_src>

<mosaic_0001>
module attributes {stable_mosaic.version = 11 : i64} {
  func.func @feature_proj_kernel(%arg0: i32, %arg1: memref<1x8x32xbf16, #tpu.memory_space<vmem>>, %arg2: memref<1x8x32xbf16, #tpu.memory_space<vmem>>, %arg3: memref<1x8x32xbf16, #tpu.memory_space<vmem>>, %arg4: memref<1x8x32xbf16, #tpu.memory_space<vmem>>, %arg5: memref<1x1x1xf32, #tpu.memory_space<vmem>>, %arg6: memref<1x8x1xf32, #tpu.memory_space<vmem>>, %arg7: memref<2x32x64xbf16, #tpu.memory_space<vmem>>, %arg8: memref<2x2x64xf32, #tpu.memory_space<vmem>>, %arg9: memref<2x1x64xf32, #tpu.memory_space<vmem>>, %arg10: memref<2x1x8x64xf32, #tpu.memory_space<vmem>>) attributes {dimension_semantics = [#tpu.dimension_semantics<parallel>], iteration_bounds = array<i64: 2>, scalar_prefetch = 0 : i64, scratch_operands = 0 : i64, tpu.core_type = #tpu.core_type<tc>, window_params = [{transform_indices = @transform_0, window_bounds = array<i64: 1, 8, 32>}, {transform_indices = @transform_1, window_bounds = array<i64: 1, 8, 32>}, {transform_indices = @transform_2, window_bounds = array<i64: 1, 8, 32>}, {transform_indices = @transform_3, window_bounds = array<i64: 1, 8, 32>}, {transform_indices = @transform_4, window_bounds = array<i64: 1, 1, 1>}, {transform_indices = @transform_5, window_bounds = array<i64: 1, 8, 1>}, {pipeline_mode = #tpu.pipeline_mode<synchronous>, transform_indices = @transform_6, window_bounds = array<i64: 2, 32, 64>}, {pipeline_mode = #tpu.pipeline_mode<synchronous>, transform_indices = @transform_7, window_bounds = array<i64: 2, 2, 64>}, {pipeline_mode = #tpu.pipeline_mode<synchronous>, transform_indices = @transform_8, window_bounds = array<i64: 2, 1, 64>}, {transform_indices = @transform_9, window_bounds = array<i64: 2, 1, 8, 64>}]} {
    %c0 = arith.constant 0 : index
    %c0_0 = arith.constant 0 : index
    %c0_1 = arith.constant 0 : index
    %0 = vector.load %arg1[%c0, %c0_0, %c0_1] : memref<1x8x32xbf16, #tpu.memory_space<vmem>>, vector<1x8x32xbf16>
    %1 = vector.shape_cast %0 : vector<1x8x32xbf16> to vector<8x32xbf16>
    %2 = arith.extf %1 : vector<8x32xbf16> to vector<8x32xf32>
    %c0_2 = arith.constant 0 : index
    %c0_3 = arith.constant 0 : index
    %c0_4 = arith.constant 0 : index
    %3 = vector.load %arg2[%c0_2, %c0_3, %c0_4] : memref<1x8x32xbf16, #tpu.memory_space<vmem>>, vector<1x8x32xbf16>
    %4 = vector.shape_cast %3 : vector<1x8x32xbf16> to vector<8x32xbf16>
    %5 = arith.extf %4 : vector<8x32xbf16> to vector<8x32xf32>
    %6 = arith.addf %2, %5 : vector<8x32xf32>
    %c0_5 = arith.constant 0 : index
    %c0_6 = arith.constant 0 : index
    %c0_7 = arith.constant 0 : index
    %7 = vector.load %arg3[%c0_5, %c0_6, %c0_7] : memref<1x8x32xbf16, #tpu.memory_space<vmem>>, vector<1x8x32xbf16>
    %8 = vector.shape_cast %7 : vector<1x8x32xbf16> to vector<8x32xbf16>
    %9 = arith.extf %8 : vector<8x32xbf16> to vector<8x32xf32>
    %10 = arith.addf %6, %9 : vector<8x32xf32>
    %c0_8 = arith.constant 0 : index
    %c0_9 = arith.constant 0 : index
    %c0_10 = arith.constant 0 : index
    %11 = vector.load %arg4[%c0_8, %c0_9, %c0_10] : memref<1x8x32xbf16, #tpu.memory_space<vmem>>, vector<1x8x32xbf16>
    %12 = vector.shape_cast %11 : vector<1x8x32xbf16> to vector<8x32xbf16>
    %13 = arith.extf %12 : vector<8x32xbf16> to vector<8x32xf32>
    %14 = arith.addf %10, %13 : vector<8x32xf32>
    %cst = arith.constant 2.500000e-01 : f32
    %15 = vector.broadcast %cst : f32 to vector<8x32xf32>
    %16 = arith.mulf %14, %15 : vector<8x32xf32>
    %cst_11 = arith.constant dense<0.000000e+00> : vector<8xf32>
    %17 = vector.multi_reduction <add>, %16, %cst_11 [1] : vector<8x32xf32> to vector<8xf32>
    %18 = vector.shape_cast %17 : vector<8xf32> to vector<8x1xf32>
    %cst_12 = arith.constant 3.200000e+01 : f32
    %19 = vector.broadcast %cst_12 : f32 to vector<8x1xf32>
    %20 = arith.divf %18, %19 : vector<8x1xf32>
    %c0_13 = arith.constant 0 : index
    %c0_14 = arith.constant 0 : index
    %c0_15 = arith.constant 0 : index
    %21 = vector.load %arg5[%c0_13, %c0_14, %c0_15] : memref<1x1x1xf32, #tpu.memory_space<vmem>>, vector<1x1x1xf32>
    %22 = vector.shape_cast %21 : vector<1x1x1xf32> to vector<1x1xf32>
    %23 = vector.broadcast %22 : vector<1x1xf32> to vector<8x1xf32>
    %24 = arith.subf %20, %23 : vector<8x1xf32>
    %c0_16 = arith.constant 0 : index
    %c0_17 = arith.constant 0 : index
    %c0_18 = arith.constant 0 : index
    %25 = vector.load %arg6[%c0_16, %c0_17, %c0_18] : memref<1x8x1xf32, #tpu.memory_space<vmem>>, vector<1x8x1xf32>
    %26 = vector.shape_cast %25 : vector<1x8x1xf32> to vector<8x1xf32>
    %27 = arith.truncf %16 : vector<8x32xf32> to vector<8x32xbf16>
    %c0_19 = arith.constant 0 : index
    %c0_20 = arith.constant 0 : index
    %c0_21 = arith.constant 0 : index
    %28 = vector.load %arg7[%c0_19, %c0_20, %c0_21] : memref<2x32x64xbf16, #tpu.memory_space<vmem>>, vector<1x32x64xbf16>
    %29 = vector.shape_cast %28 : vector<1x32x64xbf16> to vector<32x64xbf16>
    %cst_22 = arith.constant dense<0.000000e+00> : vector<8x64xf32>
    %30 = tpu.matmul %27, %29, %cst_22 {dimension_numbers = #tpu.dot_dimension_numbers<[1], [0], [0], [1], [0, 0, 1, 1], [], []>} : vector<8x32xbf16>, vector<32x64xbf16>, vector<8x64xf32> -> vector<8x64xf32>
    %c0_23 = arith.constant 0 : index
    %c0_24 = arith.constant 0 : index
    %c0_25 = arith.constant 0 : index
    %31 = vector.load %arg8[%c0_23, %c0_24, %c0_25] : memref<2x2x64xf32, #tpu.memory_space<vmem>>, vector<1x1x64xf32>
    %32 = vector.shape_cast %31 : vector<1x1x64xf32> to vector<1x64xf32>
    %33 = vector.broadcast %24 : vector<8x1xf32> to vector<8x64xf32>
    %34 = vector.broadcast %32 : vector<1x64xf32> to vector<8x64xf32>
    %35 = arith.mulf %33, %34 : vector<8x64xf32>
    %36 = arith.addf %30, %35 : vector<8x64xf32>
    %c0_26 = arith.constant 0 : index
    %c1 = arith.constant 1 : index
    %c0_27 = arith.constant 0 : index
    %37 = vector.load %arg8[%c0_26, %c1, %c0_27] : memref<2x2x64xf32, #tpu.memory_space<vmem>>, vector<1x1x64xf32>
    %38 = vector.shape_cast %37 : vector<1x1x64xf32> to vector<1x64xf32>
    %39 = vector.broadcast %26 : vector<8x1xf32> to vector<8x64xf32>
    %40 = vector.broadcast %38 : vector<1x64xf32> to vector<8x64xf32>
    %41 = arith.mulf %39, %40 : vector<8x64xf32>
    %42 = arith.addf %36, %41 : vector<8x64xf32>
    %c0_28 = arith.constant 0 : index
    %c0_29 = arith.constant 0 : index
    %c0_30 = arith.constant 0 : index
    %43 = vector.load %arg9[%c0_28, %c0_29, %c0_30] : memref<2x1x64xf32, #tpu.memory_space<vmem>>, vector<1x1x64xf32>
    %44 = vector.shape_cast %43 : vector<1x1x64xf32> to vector<1x64xf32>
    %45 = vector.broadcast %44 : vector<1x64xf32> to vector<8x64xf32>
    %46 = arith.addf %42, %45 : vector<8x64xf32>
    %c0_31 = arith.constant 0 : index
    %c0_32 = arith.constant 0 : index
    %c0_33 = arith.constant 0 : index
    %c0_34 = arith.constant 0 : index
    %47 = vector.load %arg10[%c0_31, %c0_32, %c0_33, %c0_34] : memref<2x1x8x64xf32, #tpu.memory_space<vmem>>, vector<1x1x8x64xf32>
    %48 = vector.shape_cast %47 : vector<1x1x8x64xf32> to vector<8x64xf32>
    %49 = vector.shape_cast %46 : vector<8x64xf32> to vector<1x1x8x64xf32>
    tpu.vector_store %arg10[%c0_31, %c0_32, %c0_33, %c0_34], %49 {strides = array<i32>} : memref<2x1x8x64xf32, #tpu.memory_space<vmem>>, vector<1x1x8x64xf32>,
    %c1_35 = arith.constant 1 : index
    %c0_36 = arith.constant 0 : index
    %c0_37 = arith.constant 0 : index
    %50 = vector.load %arg7[%c1_35, %c0_36, %c0_37] : memref<2x32x64xbf16, #tpu.memory_space<vmem>>, vector<1x32x64xbf16>
    %51 = vector.shape_cast %50 : vector<1x32x64xbf16> to vector<32x64xbf16>
    %cst_38 = arith.constant dense<0.000000e+00> : vector<8x64xf32>
    %52 = tpu.matmul %27, %51, %cst_38 {dimension_numbers = #tpu.dot_dimension_numbers<[1], [0], [0], [1], [0, 0, 1, 1], [], []>} : vector<8x32xbf16>, vector<32x64xbf16>, vector<8x64xf32> -> vector<8x64xf32>
    %c1_39 = arith.constant 1 : index
    %c0_40 = arith.constant 0 : index
    %c0_41 = arith.constant 0 : index
    %53 = vector.load %arg8[%c1_39, %c0_40, %c0_41] : memref<2x2x64xf32, #tpu.memory_space<vmem>>, vector<1x1x64xf32>
    %54 = vector.shape_cast %53 : vector<1x1x64xf32> to vector<1x64xf32>
    %55 = vector.broadcast %24 : vector<8x1xf32> to vector<8x64xf32>
    %56 = vector.broadcast %54 : vector<1x64xf32> to vector<8x64xf32>
    %57 = arith.mulf %55, %56 : vector<8x64xf32>
    %58 = arith.addf %52, %57 : vector<8x64xf32>
    %c1_42 = arith.constant 1 : index
    %c1_43 = arith.constant 1 : index
    %c0_44 = arith.constant 0 : index
    %59 = vector.load %arg8[%c1_42, %c1_43, %c0_44] : memref<2x2x64xf32, #tpu.memory_space<vmem>>, vector<1x1x64xf32>
    %60 = vector.shape_cast %59 : vector<1x1x64xf32> to vector<1x64xf32>
    %61 = vector.broadcast %26 : vector<8x1xf32> to vector<8x64xf32>
    %62 = vector.broadcast %60 : vector<1x64xf32> to vector<8x64xf32>
    %63 = arith.mulf %61, %62 : vector<8x64xf32>
    %64 = arith.addf %58, %63 : vector<8x64xf32>
    %c1_45 = arith.constant 1 : index
    %c0_46 = arith.constant 0 : index
    %c0_47 = arith.constant 0 : index
    %65 = vector.load %arg9[%c1_45, %c0_46, %c0_47] : memref<2x1x64xf32, #tpu.memory_space<vmem>>, vector<1x1x64xf32>
    %66 = vector.shape_cast %65 : vector<1x1x64xf32> to vector<1x64xf32>
    %67 = vector.broadcast %66 : vector<1x64xf32> to vector<8x64xf32>
    %68 = arith.addf %64, %67 : vector<8x64xf32>
    %c1_48 = arith.constant 1 : index
    %c0_49 = arith.constant 0 : index
    %c0_50 = arith.constant 0 : index
    %c0_51 = arith.constant 0 : index
    %69 = vector.load %arg10[%c1_48, %c0_49, %c0_50, %c0_51] : memref<2x1x8x64xf32, #tpu.memory_space<vmem>>, vector<1x1x8x64xf32>
    %70 = vector.shape_cast %69 : vector<1x1x8x64xf32> to vector<8x64xf32>
    %71 = vector.shape_cast %68 : vector<8x64xf32> to vector<1x1x8x64xf32>
    tpu.vector_store %arg10[%c1_48, %c0_49, %c0_50, %c0_51], %71 {strides = array<i32>} : memref<2x1x8x64xf32, #tpu.memory_space<vmem>>, vector<1x1x8x64xf32>,
    return
  }
  func.func @transform_0(%arg0: i32) -> (i32, i32, i32) {
    %c0_i32 = arith.constant 0 : i32
    %c0_i32_0 = arith.constant 0 : i32
    %c0_i32_1 = arith.constant 0 : i32
    return %arg0, %c0_i32, %c0_i32_0 : i32, i32, i32
  }
  func.func @transform_1(%arg0: i32) -> (i32, i32, i32) {
    %c0_i32 = arith.constant 0 : i32
    %c0_i32_0 = arith.constant 0 : i32
    %c0_i32_1 = arith.constant 0 : i32
    return %arg0, %c0_i32, %c0_i32_0 : i32, i32, i32
  }
  func.func @transform_2(%arg0: i32) -> (i32, i32, i32) {
    %c0_i32 = arith.constant 0 : i32
    %c0_i32_0 = arith.constant 0 : i32
    %c0_i32_1 = arith.constant 0 : i32
    return %arg0, %c0_i32, %c0_i32_0 : i32, i32, i32
  }
  func.func @transform_3(%arg0: i32) -> (i32, i32, i32) {
    %c0_i32 = arith.constant 0 : i32
    %c0_i32_0 = arith.constant 0 : i32
    %c0_i32_1 = arith.constant 0 : i32
    return %arg0, %c0_i32, %c0_i32_0 : i32, i32, i32
  }
  func.func @transform_4(%arg0: i32) -> (i32, i32, i32) {
    %c0_i32 = arith.constant 0 : i32
    %c0_i32_0 = arith.constant 0 : i32
    %c0_i32_1 = arith.constant 0 : i32
    return %arg0, %c0_i32, %c0_i32_0 : i32, i32, i32
  }
  func.func @transform_5(%arg0: i32) -> (i32, i32, i32) {
    %c0_i32 = arith.constant 0 : i32
    %c0_i32_0 = arith.constant 0 : i32
    %c0_i32_1 = arith.constant 0 : i32
    return %arg0, %c0_i32, %c0_i32_0 : i32, i32, i32
  }
  func.func @transform_6(%arg0: i32) -> (i32, i32, i32) {
    %c0_i32 = arith.constant 0 : i32
    %c0_i32_0 = arith.constant 0 : i32
    %c0_i32_1 = arith.constant 0 : i32
    %c0_i32_2 = arith.constant 0 : i32
    return %c0_i32, %c0_i32_0, %c0_i32_1 : i32, i32, i32
  }
  func.func @transform_7(%arg0: i32) -> (i32, i32, i32) {
    %c0_i32 = arith.constant 0 : i32
    %c0_i32_0 = arith.constant 0 : i32
    %c0_i32_1 = arith.constant 0 : i32
    %c0_i32_2 = arith.constant 0 : i32
    return %c0_i32, %c0_i32_0, %c0_i32_1 : i32, i32, i32
  }
  func.func @transform_8(%arg0: i32) -> (i32, i32, i32) {
    %c0_i32 = arith.constant 0 : i32
    %c0_i32_0 = arith.constant 0 : i32
    %c0_i32_1 = arith.constant 0 : i32
    %c0_i32_2 = arith.constant 0 : i32
    return %c0_i32, %c0_i32_0, %c0_i32_1 : i32, i32, i32
  }
  func.func @transform_9(%arg0: i32) -> (i32, i32, i32, i32) {
    %c0_i32 = arith.constant 0 : i32
    %c0_i32_0 = arith.constant 0 : i32
    %c0_i32_1 = arith.constant 0 : i32
    %c0_i32_2 = arith.constant 0 : i32
    return %c0_i32, %arg0, %c0_i32_0, %c0_i32_1 : i32, i32, i32, i32
  }
}

</mosaic_0001>

<bundles_post_ra>
// kernel: tpu_custom_call.1
= control target key start
LH: loop header
LB: loop body
LE: loop exit
PB: predicated region body
PF: predicated region fallthrough
CT: control target
= control target key end

     0   :  { %s1327_s0 = inlined_call_operand.vmem [shape: bf16[2,8,32], index: 0, kind: input, shape index: {}]   ;;  %s1328_s1 = inlined_call_operand.vmem [shape: bf16[2,8,32], index: 1, kind: input, shape index: {}]   ;;  %s1329_s2 = inlined_call_operand.hbm [shape: bf16[2,8,32], index: 2, kind: input, shape index: {}]   ;;  %s1330_s3 = inlined_call_operand.hbm [shape: bf16[2,8,32], index: 3, kind: input, shape index: {}]   ;;  %s1331_s4 = inlined_call_operand.vmem [shape: f32[2,1,1], index: 4, kind: input, shape index: {}]   ;;  %s1332_s5 = inlined_call_operand.vmem [shape: f32[2,8,1], index: 5, kind: input, shape index: {}]   ;;  %s1333_s6 = inlined_call_operand.hbm [shape: bf16[2,32,64], index: 6, kind: input, shape index: {}]   ;;  %s1334_s7 = inlined_call_operand.vmem [shape: f32[2,2,64], index: 7, kind: input, shape index: {}]   ;;  %s1335_s8 = inlined_call_operand.vmem [shape: f32[2,1,64], index: 8, kind: input, shape index: {}]   ;;  %s1336_s9 = inlined_call_operand.hbm [shape: f32[2,2,8,64], index: 9, kind: output, shape index: {}]  }
   0x1   :  { %1345 = sst [smem:[#allocation20_spill]] %s1333_s6 }
   0x2   :  { %14 = vsyncpa [#allocation3], 0 }
   0x3   :  { %16 = vsyncpa [#allocation3 + $0x1], 0 }
   0x4   :  { %17 = vsyncpa [#allocation6], 0 }
   0x5   :  { %19 = vsyncpa [#allocation6 + $0x1], 0 }
   0x6   :  { %20 = vsyncpa [#allocation4], 0 }
   0x7   :  { %22 = vsyncpa [#allocation4 + $0x1], 0  ;;  %s1119_s30 = smov 0   ;;  %s1121_s10 = smov 0  }
   0x8   :  { %s1123_s11 = smov 0   ;;  %s1125_s12 = smov 0  }
   0x9 LB: > { %1346 = sst [smem:[#allocation13_spill]] %s1047_s30  ;;  %s1143_s16 = sadd.s32 4294967295, %s1059_s12   ;;  %s1059_s12 = sphi %s1125_s12, %s1365_s12   ;;  %s1055_s11 = sphi %s1123_s11, %s1367_s11   ;;  %s1051_s10 = sphi %s1121_s10, %s1369_s10   ;;  %s1047_s30 = sphi %s1119_s30, %s1368_s30  }
   0xa   : > { %1347 = sst [smem:[#allocation14_spill]] %s1055_s11  ;;  %p770_p0 = scmp.ge.s32.totalorder %s1059_s12, 1 }
   0xb   : > { %1348 = sst [smem:[#allocation15_spill]] %s1059_s12  ;;  %p101_p1 = scmp.eq.s32.totalorder %s1143_s16, 0 }
   0xc   : > { %s1349_s6 = sld [smem:[#allocation20_spill]]  ;;  %p278_p2 = scmp.lt.s32.totalorder %s1059_s12, 3 }
   0xd   : > { %s1061_s18 = smov [#allocation7]   ;;  %s1062_s20 = smov 64  }
   0xe   : > { %p1148_p3 = pnand %p770_p0, %p278_p2  ;;  %s291_s19 = sshll.u32 %s1061_s18, 4  ;;  %s292_s19 = int_to_ptr.vmem [resolvable:$true] %s291_s19 }
   0xf   : > { %s1063_s21 = smov 4   ;;  %s769_s22 = sadd.s32 4294967294, %s1059_s12  }
  0x10   : > { %p825_p4 = pneg %p1148_p3  ;;  %s1159_s23 = sadd.s32 1, %s1059_s12  }
  0x11   : > { %1351 = sst [smem:[#allocation16_spill]] %s1159_s23  ;;  %s87_s24 = sadd.s32 1, %s1055_s11 }
  0x12   : > { %s289_s15 = sshll.u32 %s1349_s6, 4  ;;  %p826_p6 = pnand %p825_p4, %p101_p1  ;;  %s290_s15 = int_to_ptr.hbm [resolvable:$true] %s289_s15 }
  0x13   : > { %s84_s25 = ssub.s32 %s1059_s12, %s1159_s23  ;;  %p94_p7 = scmp.ne.s32.totalorder %s1055_s11, %s1051_s10 }
  0x14   : > { %828 = dma.hbm_to_vmem [thread:$0]  (!%p826_p6), %s290_s15, 512, %s292_s19, [#allocation6], %s1062_s20, %s1062_s20, %s1063_s21  }
  0x15   : > { %p85_p8 = scmp.eq.s32.totalorder %s84_s25, 0  ;;  %p95_p9 = scmp.eq.s32.totalorder %s1059_s12, 0 }
  0x16   : > { %p100_p10 = scmp.ne.s32.totalorder %s1051_s10, %s1047_s30  ;;  %p265_p11 = scmp.eq.s32.totalorder %s1143_s16, 1 }
  0x17   : > { %s1171_s26 = scalar_select %p85_p8, %s1055_s11, %s87_s24  }
  0x18   : > { %p1173_p12 = por %p95_p9, %p94_p7  ;;  %p1179_p13 = por %p101_p1, %p100_p10 }
  0x19   : > { %1352 = sst [smem:[#allocation17_spill]] %s1171_s26  ;;  %p1183_p0 = por %p265_p11, %p94_p7 }
  0x1a   : > { %p271_p2 = scmp.eq.s32.totalorder %s769_s22, 1  ;;  %p841_p4 = scmp.lt.s32.totalorder %s1059_s12, 2 }
  0x1b   : > { %s1355_s29 = scalar_select %p1183_p0, 1, 0 }
  0x1c   : > { %s325_s13 = sand.u32 1, %s1055_s11   ;;  %p1189_p6 = por %p271_p2, %p100_p10 }
  0x1d   : > { %1356 = sst [smem:[#allocation18_spill]] %s1355_s29  ;;  %s773_s15 = sshll.u32 %s325_s13, 2 }
  0x1e   : > { %s1357_s14 = scalar_select %p1189_p6, 1, 0 }
  0x1f   : > { %s774_s18 = sshll.u32 %s1059_s12, 2  ;;  %s329_s25 = scalar_lea.vmem [#allocation2], %s773_s15 }
  0x20   : > { %1358 = sst [smem:[#allocation19_spill]] %s1357_s14  ;;  %s333_s21 = scalar_lea.hbm %s1329_s2, %s774_s18 }
  0x21   : > { %s335_s24 = sshll.u32 %s333_s21, 4  ;;  %s337_s6 = sshll.u32 %s329_s25, 4  ;;  %s336_s24 = int_to_ptr.hbm [resolvable:$true] %s335_s24  ;;  %s338_s6 = int_to_ptr.vmem [resolvable:$true] %s337_s6 }
  0x22   : > { %p1199_p7 = pnand %p841_p4, %p1173_p12  ;;  %s352_s23 = scalar_lea.hbm %s1330_s3, %s774_s18 }
  0x23   : > { %s344_s14 = sand.u32 1, %s1059_s12   ;;  %s326_s30 = scalar_lea.sflag [#allocation3], %s325_s13 }
  0x24   : > { %s925_s19 = sshra.s32 %s336_s24, 4  ;;  %p929_p9 = pneg %p1199_p7  ;;  %s926_s19 = int_to_ptr.hbm [resolvable:$true] %s925_s19 }
  0x25   : > { %s927_s20 = scalar_lea.hbm %s926_s19, 4  ;;  %s932_s25 = scalar_lea.hbm %s1329_s2, 8 }
  0x26   : > { %p928_p8 = scmp.ne.s32.totalorder %s926_s19, %s927_s20  ;;  %p933_p12 = scmp.lt.s32.totalorder %s926_s19, %s1329_s2 }
  0x27   : > { %p934_p2 = scmp.lt.s32.totalorder %s932_s25, %s927_s20 }
  0x28   : > { %p930_p10 = pnand %p929_p9, %p928_p8 }
  0x29   : > { %p935_p4 = por %p934_p2, %p933_p12 }
  0x2a   : > { %p931_p11 = pneg %p930_p10 }
  0x2c   : > { %p936_p5 = pnand %p935_p4, %p931_p11 }
  0x2e   : > { %939 = shalt.err (!%p936_p5)
}
  0x2f   : > { %832 = dma.hbm_to_vmem [thread:$0]  (!%p1199_p7), %s336_s24, 64, %s338_s6, %s326_s30  }
  0x30   : > { %s354_s13 = sshll.u32 %s352_s23, 4  ;;  %s348_s18 = scalar_lea.vmem [#allocation5], %s773_s15  ;;  %s355_s13 = int_to_ptr.hbm [resolvable:$true] %s354_s13 }
  0x31   : > { %s356_s12 = sshll.u32 %s348_s18, 4  ;;  %s345_s29 = scalar_lea.sflag [#allocation6], %s344_s14  ;;  %s357_s12 = int_to_ptr.vmem [resolvable:$true] %s356_s12 }
  0x32   : > { %s955_s27 = sshra.s32 %s355_s13, 4  ;;  %s962_s25 = scalar_lea.hbm %s1330_s3, 8  ;;  %s956_s27 = int_to_ptr.hbm [resolvable:$true] %s955_s27 }
  0x33   : > { %s957_s21 = scalar_lea.hbm %s956_s27, 4  ;;  %p963_p5 = scmp.lt.s32.totalorder %s956_s27, %s1330_s3 }
  0x34   : > { %p958_p8 = scmp.ne.s32.totalorder %s956_s27, %s957_s21  ;;  %p964_p11 = scmp.lt.s32.totalorder %s962_s25, %s957_s21 }
  0x36   : > { %p960_p10 = pnand %p958_p8, %p929_p9  ;;  %p965_p2 = por %p964_p11, %p963_p5 }
  0x38   : > { %p961_p12 = pneg %p960_p10 }
  0x3a   : > { %p966_p4 = pnand %p965_p2, %p961_p12 }
  0x3c   : > { %969 = shalt.err (!%p966_p4)
}
  0x3d   : > { %835 = dma.hbm_to_vmem [thread:$0]  (!%p1199_p7), %s355_s13, 64, %s357_s12, %s345_s29  }
  0x3e   : > { %378 = sbr.rel (%p1148_p3) target bundleno = 341 (0x155), region = 56  ;;  %s1234_s30 = sand.u32 (!%p1148_p3), 1, %s1051_s10  }
  0x3f   : > { %s778_s23 = sshll.u32 (!%p1148_p3), %s1234_s30, 2  ;;  %s381_s14 = scalar_lea.sflag (!%p1148_p3), [#allocation3], %s1234_s30 }
  0x40   : > { %s384_s15 = scalar_lea.vmem (!%p1148_p3), [#allocation2], %s778_s23 }
  0x43   : > { %1030 = dma.done.wait (%p1179_p13), %s381_s14, 64  }
  0x44   : > { %1032 = vsyncadd (%p1179_p13), %s381_s14, 4294967232  ;;  %s390_s12 = sand.u32 1, %s1143_s16   ;;  %s394_s17 = scalar_lea.vmem [#allocation5], %s778_s23 }
  0x45   : > { %s391_s29 = scalar_lea.sflag [#allocation6], %s390_s12 }
  0x46   : > { %1034 = dma.done.wait (%p1179_p13), %s391_s29, 64  }
  0x47   : > { %1036 = vsyncadd (%p1179_p13), %s391_s29, 4294967232 }
  0x48   : > { %1038 = dma.done.wait (%p101_p1), [#allocation6], 512  }
  0x49   : > { %1040 = vsyncadd (%p101_p1), [#allocation6], 4294966784  ;;  %p455_p3 = scmp.lt.s32.totalorder %s1143_s16, 1  ;;  %v476_v2 = vld [vmem:[%s384_s15] sm:$0xf]  ;;  %v812_v7 = vld [vmem:[#allocation7 + $0x8] sm:$0xff] }
  0x4a   : > { %v477_v5 = vunpack.c.l.bf16 %v476_v2  ;;  %v479_v6 = vld [vmem:[%s394_s17] sm:$0xf]  ;;  %535 = vmatpush.bf16.msra.mxu0 %v812_v7  ;;  %v811_v11 = vld [vmem:[#allocation7] sm:$0xff]  ;;  %v813_v12 = vld [vmem:[#allocation7 + $0x10] sm:$0xff]  ;;  %vm483_vm0 = vcmask 261120   ;;  %v1064_v18 = vmov 0  }
  0x4b   : > { %s1253_s24 = scalar_select %p455_p3, %s1143_s16, 1  ;;  %v814_v8 = vld [vmem:[#allocation7 + $0x18] sm:$0xff]  ;;  %v480_v10 = vunpack.c.l.bf16 %v479_v6  ;;  %884 = vset.pattern.permute.xlu0 %v1064_v18  ;;  %885 = vset.pattern.permute.xlu1 %v1064_v18  ;;  %v1065_v19 = vmov 32.0   ;;  %v887_v35 = vld [vmem:[%s1334_s7] ss:$0 sm:$0xff]  ;;  %vm556_vm2 = vcmask 523264  }
  0x4c   : > { %585 = vmatpush.bf16.msra.mxu1 %v814_v8  ;;  %893 = vrcp.f32 %v1065_v19  ;;  %v888_v36 = vld [vmem:[%s1334_s7 + $0x2] ss:$0 sm:$0xff]  ;;  %s781_s13 = sshll.u32 %s1234_s30, 4  ;;  %v889_v37 = vld [vmem:[%s1334_s7 + $0x1] ss:$0 sm:$0xff]  ;;  %s605_s17 = scalar_lea.sflag [#allocation4], %s1234_s30 }
  0x4d   : > { %s782_s22 = sshll.u32 %s1253_s24, 2  ;;  %s465_s25 = scalar_lea.vmem %s1331_s4, %s1253_s24  ;;  %v891_v38 = vld [vmem:[%s1334_s7 + $0x3] ss:$0 sm:$0xff]  ;;  %v890_v47 = vld [vmem:[%s1335_s8] ss:$0 sm:$0xff] }
  0x4e   : > { %s458_s18 = scalar_lea.vmem %s1327_s0, %s782_s22  ;;  %s462_s21 = scalar_lea.vmem %s1328_s1, %s782_s22  ;;  %536 = vmatpush.bf16.msra.mxu0 %v811_v11  ;;  %v886_v27 = vld [vmem:[%s465_s25] ss:$0 sm:$0xff]  ;;  %v892_v48 = vld [vmem:[%s1335_s8 + $0x1] ss:$0 sm:$0xff] }
  0x4f   : > { %v471_v0 = vld [vmem:[%s458_s18] sm:$0xf]  ;;  %s784_s11 = sshll.u32 %s1253_s24, 3  ;;  %s1005_s18 = scalar_lea.hbm %s1336_s9, 32 }
  0x50   : > { %v473_v1 = vld [vmem:[%s462_s21] sm:$0xf]  ;;  %v472_v3 = vunpack.c.l.bf16 %v471_v0  ;;  %586 = vmatpush.bf16.msra.mxu1 %v813_v12  ;;  %s469_s14 = scalar_lea.vmem %s1332_s5, %s784_s11  ;;  %s808_s21 = sshll.u32 %s1143_s16, 3 }
  0x51   : > { %v474_v4 = vunpack.c.l.bf16 %v473_v1  ;;  %v500_v20 = vld [vmem:[%s469_s14] sm:$0xff]  ;;  %s615_s25 = scalar_lea.hbm %s1336_s9, %s808_s21  ;;  %s454_s16 = scalar_lea.vmem [#allocation8], %s781_s13 }
  0x52   : > { %545 = vperm.xlu1 %885, %v500_v20   ;;  %v894_v21 = vpop.eup %893  ;;  %s616_s15 = sshll.u32 %s454_s16, 4  ;;  %s618_s29 = sshll.u32 %s615_s25, 4  ;;  %s617_s15 = int_to_ptr.vmem [resolvable:$true] %s616_s15  ;;  %s619_s29 = int_to_ptr.hbm [resolvable:$true] %s618_s29 }
  0x53   : > { %v475_v9 = vadd.f32 %v474_v4, %v472_v3  ;;  %v488_v22 = vmul.f32 32.0, %v894_v21  ;;  %vm492_vm1 = vweird.f32 %v894_v21  ;;  %s999_s22 = sshra.s32 %s619_s29, 4  ;;  %s1000_s22 = int_to_ptr.hbm [resolvable:$true] %s999_s22 }
  0x54   : > { %s1001_s26 = scalar_lea.hbm %s1000_s22, 16  ;;  %p1006_p9 = scmp.lt.s32.totalorder %s1000_s22, %s1336_s9 }
  0x55   : > { %v478_v13 = vadd.f32 %v477_v5, %v475_v9  ;;  %v489_v23 = vsub.f32 1.0, %v488_v22  ;;  %p1002_p1 = scmp.ne.s32.totalorder %s1000_s22, %s1001_s26  ;;  %p1007_p8 = scmp.lt.s32.totalorder %s1005_s18, %s1001_s26 }
  0x57   : > { %v481_v14 = vadd.f32 %v480_v10, %v478_v13  ;;  %v490_v24 = vmul.f32 %v894_v21, %v489_v23  ;;  %p1003_p13 = pnand %p1002_p1, %p1183_p0  ;;  %p1008_p10 = por %p1007_p8, %p1006_p9 }
  0x59   : > { %v482_v15 = vmul.f32 0.25, %v481_v14  ;;  %v491_v25 = vadd.f32 %v894_v21, %v490_v24  ;;  %p1004_p7 = pneg %p1003_p13 }
  0x5b   : > { %v484_v16 = vsel %vm483_vm0, %v482_v15, 0.0  ;;  %v501_v17 = vpack.c.bf16 %v482_v15, %v482_v15  ;;  %v493_v26 = vsel %vm492_vm1, %v894_v21, %v491_v25  ;;  %p1009_p12 = pnand %p1008_p10, %p1004_p7 }
  0x5c   : > { %485 = vadd.xlane.f32.xlu0 %v484_v16 }
  0x5d   : > { %793 = vmatmul.msk.bf16.vlgmr.msra.gmra.mxu0 %vm483_vm0, %v501_v17  ;;  %803 = vmatmul.msk.bf16.vlgmr.msra.gmra.mxu1 %vm483_vm0, %v501_v17 }
  0xc4   : > { %v546_v39 = vpop.permute.xlu1 %545 }
  0xc5   : > { %v549_v43 = vmul.f32 %v889_v37, %v546_v39  ;;  %v594_v44 = vmul.f32 %v891_v38, %v546_v39 }
  0xcf   : > { %v486_v28 = vpop.xlane.xlu0 %485 }
  0xd0   : > { %v494_v29 = vmul.f32 %v493_v26, %v486_v28 }
  0xd2   : > { %v499_v30 = vsub.f32 %v494_v29, %v886_v27 }
  0xd4   : > { %509 = vperm.xlu0 %884, %v499_v30  }
  0xda   : > { %v538_v31 = vpop.f32.mrf.mxu0  ;;  %v588_v32 = vpop.f32.mrf.mxu1 }
  0xe2   : > { %v540_v33 = vpop.f32.mrf.mxu0  ;;  %v590_v34 = vpop.f32.mrf.mxu1 }
 0x146   : > { %v510_v40 = vpop.permute.xlu0 %509 }
 0x147   : > { %v513_v41 = vmul.f32 %v887_v35, %v510_v40  ;;  %v566_v42 = vmul.f32 %v888_v36, %v510_v40 }
 0x149   : > { %v539_v45 = vadd.f32 %v538_v31, %v513_v41  ;;  %v589_v46 = vadd.f32 %v588_v32, %v566_v42 }
 0x14b   : > { %v550_v49 = vadd.f32 %v549_v43, %v539_v45  ;;  %v595_v50 = vadd.f32 %v594_v44, %v589_v46 }
 0x14d   : > { %v555_v51 = vadd.f32 %v890_v47, %v550_v49  ;;  %v601_v52 = vadd.f32 %v892_v48, %v595_v50 }
 0x14f   : > { %557 = vst.msk [vmem:[%s454_s16] sm:$0xff] %vm556_vm2, %v555_v51 }
 0x150   : > { %806 = vst.msk [vmem:[%s454_s16 + $0x8] sm:$0xff] %vm556_vm2, %v601_v52 }
 0x151   : > { %1012 = shalt.err (!%p1009_p12)
}
 0x152   : > { %s1066_s30 = smov 128   ;;  %s1067_s21 = smov 256  }
 0x153   : > { %s1068_s19 = smov 8  }
 0x154   : > { %823 = dma.vmem_to_hbm [thread:$0]  (%p1183_p0), %s617_s15, 256, %s619_s29, %s605_s17, %s1066_s30, %s1067_s21, %s1068_s19  }
 0x155 PF: > { %s1361_s20 = sld [smem:[#allocation13_spill]] }
 0x156   : > { %s1363_s11 = sld [smem:[#allocation15_spill]] }
 0x15b   : > { %s633_s6 = sand.u32 1, %s1361_s20  }
 0x15c   : > { %p1364_p5 = scmp.ge.s32.totalorder %s1363_s11, 2  ;;  %s634_s23 = scalar_lea.sflag [#allocation4], %s633_s6 }
 0x15e   : > { %p837_p11 = pnand %p1364_p5, %p1189_p6 }
 0x160   : > { %p838_p2 = pneg %p837_p11 }
 0x162   : > { %1042 = dma.done.wait (%p838_p2), %s634_s23, 256  }
 0x163   : > { %1044 = vsyncadd (%p838_p2), %s634_s23, 4294967040  ;;  %s1365_s12 = sld [smem:[#allocation16_spill]]  ;;  %s1368_s30 = smov %s1051_s10 }
 0x164   : > { %s1366_s14 = sld [smem:[#allocation14_spill]] }
 0x165   : > { %s1367_s11 = sld [smem:[#allocation17_spill]] }
 0x169   : > { %p25_p4 = scmp.ge.s32.totalorder %s1365_s12, 4  }
 0x16a   : > { %s1369_s10 = smov %s1366_s14 }
 0x16b   :  { %27 = sbr.rel (!%p25_p4) target bundleno = 9 (0x9), region = 134 }
 0x170   :  { %640 = vsyncpa [#allocation3], 1 }
 0x171   :  { %642 = vsyncpa [#allocation3 + $0x1], 1 }
 0x172   :  { %643 = vsyncpa [#allocation6], 1 }
 0x173   :  { %645 = vsyncpa [#allocation6 + $0x1], 1 }
 0x174   :  { %646 = vsyncpa [#allocation4], 1 }
 0x175   :  { %648 = vsyncpa [#allocation4 + $0x1], 1 }

</bundles_post_ra>
